<compile_context>
chip_gen: v7x
topology: tpu7x:2x2x1
jax: 0.10.0
libtpu: 0.0.40
codegen_flags: <defaults>
</compile_context>

<pallas_src>
import jax
import jax.numpy as jnp
from jax.experimental import pallas as pl
from jax.experimental.pallas import tpu as pltpu


def _round_up(x, m):
    return (x + m - 1) // m * m


def value_net_kernel(x_ref, w1_ref, b1_ref, w2_ref, b2_ref, o_ref):
    # fc1 on the MXU: (TB, S) @ (S, H), f32 accumulate.
    h = jnp.dot(x_ref[...], w1_ref[...], preferred_element_type=jnp.float32)
    h = jnp.maximum(h + b1_ref[...], 0.0)            # bias + ReLU on the VPU

    # fc2 as a VPU multiply against the (1, H) weight row + lane reduction.
    # An N=1 MXU matmul would light up a single output column and still pay
    # full push/pop latency; this path is free filler under the fc1 matmul.
    v = jnp.sum(h * w2_ref[...], axis=-1)            # (TB,)
    v = v + b2_ref[0]                                # scalar bias from SMEM

    # Lane-dense store: one (1, 1, TB) row per grid step -> unmasked vst
    # whenever TB is a multiple of 128.
    o_ref[...] = v.reshape(o_ref.shape).astype(o_ref.dtype)


def value_network_forward(x, w1, b1, w2, b2, *, block_b=256):
    """ValueNetwork forward. x: (B, S) f32 -> (B, 1) f32.

    w1: (S, H)  (transposed vs. PyTorch's (H, S) so the kernel does x @ w1)
    b1: (H,)
    w2: (1, H)  (PyTorch fc2.weight layout; used directly as a lane row)
    b2: (1,)
    """
    B, S = x.shape
    H = w1.shape[1]

    # Batch tile: multiple of 8 sublanes; small batches stay one grid step,
    # large batches use block_b (a multiple of 128 -> lane-dense output rows).
    tb = min(block_b, _round_up(B, 8))
    g = pl.cdiv(B, tb)
    b_pad = g * tb
    if b_pad != B:
        x = jnp.pad(x, ((0, b_pad - B), (0, 0)))

    b1_row = b1.reshape(1, H)
    w2_row = w2.reshape(1, H)
    b2_s = b2.reshape(1)

    out = pl.pallas_call(
        value_net_kernel,
        out_shape=jax.ShapeDtypeStruct((g, 1, tb), jnp.float32),
        grid=(g,),
        in_specs=[
            pl.BlockSpec((tb, S), lambda i: (i, 0)),            # x tile (pipelined)
            pl.BlockSpec((S, H), lambda i: (0, 0)),             # w1 (resident)
            pl.BlockSpec((1, H), lambda i: (0, 0)),             # b1 (resident)
            pl.BlockSpec((1, H), lambda i: (0, 0)),             # w2 row (resident)
            pl.BlockSpec(memory_space=pltpu.MemorySpace.SMEM),  # b2 scalar
        ],
        out_specs=pl.BlockSpec((1, 1, tb), lambda i: (i, 0, 0)),
        compiler_params=pltpu.CompilerParams(
            # Independent batch tiles -> shardable across v7x's 2 TCs.
            dimension_semantics=("parallel",),
        ),
    )(x, w1, b1_row, w2_row, b2_s)

    return out.reshape(b_pad, 1)[:B]


def init_params(key, state_dim, hidden_dim):
    """PyTorch nn.Linear default init (uniform +/- 1/sqrt(fan_in))."""
    k1, k2, k3, k4 = jax.random.split(key, 4)
    bound1 = 1.0 / jnp.sqrt(state_dim)
    bound2 = 1.0 / jnp.sqrt(hidden_dim)
    # w1 stored as (in, out) so the kernel computes x @ w1 (== PyTorch x @ W1.T).
    w1 = jax.random.uniform(k1, (state_dim, hidden_dim), jnp.float32, -bound1, bound1)
    b1 = jax.random.uniform(k2, (hidden_dim,), jnp.float32, -bound1, bound1)
    # w2 stored in PyTorch layout (out, in) = (1, hidden): used directly as a row.
    w2 = jax.random.uniform(k3, (1, hidden_dim), jnp.float32, -bound2, bound2)
    b2 = jax.random.uniform(k4, (1,), jnp.float32, -bound2, bound2)
    return w1, b1, w2, b2


if __name__ == "__main__":
    key = jax.random.PRNGKey(0)
    kx, kp = jax.random.split(key)

    batch = 8
    state_dim = 16
    hidden_dim = 128   # module default

    x = jax.random.normal(kx, (batch, state_dim), jnp.float32)
    w1, b1, w2, b2 = init_params(kp, state_dim, hidden_dim)

    out = jax.block_until_ready(value_network_forward(x, w1, b1, w2, b2))

    # Pure-JAX reference (same math as the PyTorch module).
    ref = jnp.maximum(x @ w1 + b1, 0.0) @ w2.T + b2
    assert out.shape == (batch, 1), out.shape
    assert jnp.allclose(out, ref, atol=1e-5, rtol=1e-5), float(jnp.max(jnp.abs(out - ref)))

    print("KERNEL_OK")
</pallas_src>

<mosaic_0001>
module attributes {stable_mosaic.version = 11 : i64} {
  func.func @value_net_kernel(%arg0: i32, %arg1: memref<8x16xf32, #tpu.memory_space<vmem>>, %arg2: memref<16x128xf32, #tpu.memory_space<vmem>>, %arg3: memref<1x128xf32, #tpu.memory_space<vmem>>, %arg4: memref<1x128xf32, #tpu.memory_space<vmem>>, %arg5: memref<1xf32, #tpu.memory_space<smem>>, %arg6: memref<1x1x8xf32, #tpu.memory_space<vmem>>) attributes {dimension_semantics = [#tpu.dimension_semantics<parallel>], iteration_bounds = array<i64: 1>, scalar_prefetch = 0 : i64, scratch_operands = 0 : i64, tpu.core_type = #tpu.core_type<tc>, window_params = [{transform_indices = @transform_0, window_bounds = array<i64: 8, 16>}, {pipeline_mode = #tpu.pipeline_mode<synchronous>, transform_indices = @transform_1, window_bounds = array<i64: 16, 128>}, {pipeline_mode = #tpu.pipeline_mode<synchronous>, transform_indices = @transform_2, window_bounds = array<i64: 1, 128>}, {pipeline_mode = #tpu.pipeline_mode<synchronous>, transform_indices = @transform_3, window_bounds = array<i64: 1, 128>}, {transform_indices = @transform_4, window_bounds = array<i64: 1>}, {transform_indices = @transform_5, window_bounds = array<i64: 1, 1, 8>}]} {
    %c0 = arith.constant 0 : index
    %c0_0 = arith.constant 0 : index
    %0 = vector.load %arg1[%c0, %c0_0] : memref<8x16xf32, #tpu.memory_space<vmem>>, vector<8x16xf32>
    %c0_1 = arith.constant 0 : index
    %c0_2 = arith.constant 0 : index
    %1 = vector.load %arg2[%c0_1, %c0_2] : memref<16x128xf32, #tpu.memory_space<vmem>>, vector<16x128xf32>
    %cst = arith.constant dense<0.000000e+00> : vector<8x128xf32>
    %2 = tpu.matmul %0, %1, %cst {dimension_numbers = #tpu.dot_dimension_numbers<[1], [0], [0], [1], [0, 0, 1, 1], [], []>} : vector<8x16xf32>, vector<16x128xf32>, vector<8x128xf32> -> vector<8x128xf32>
    %c0_3 = arith.constant 0 : index
    %c0_4 = arith.constant 0 : index
    %3 = vector.load %arg3[%c0_3, %c0_4] : memref<1x128xf32, #tpu.memory_space<vmem>>, vector<1x128xf32>
    %4 = vector.broadcast %3 : vector<1x128xf32> to vector<8x128xf32>
    %5 = arith.addf %2, %4 : vector<8x128xf32>
    %cst_5 = arith.constant 0.000000e+00 : f32
    %6 = vector.broadcast %cst_5 : f32 to vector<8x128xf32>
    %7 = arith.maximumf %5, %6 : vector<8x128xf32>
    %c0_6 = arith.constant 0 : index
    %c0_7 = arith.constant 0 : index
    %8 = vector.load %arg4[%c0_6, %c0_7] : memref<1x128xf32, #tpu.memory_space<vmem>>, vector<1x128xf32>
    %9 = vector.broadcast %8 : vector<1x128xf32> to vector<8x128xf32>
    %10 = arith.mulf %7, %9 : vector<8x128xf32>
    %cst_8 = arith.constant dense<0.000000e+00> : vector<8xf32>
    %11 = vector.multi_reduction <add>, %10, %cst_8 [1] : vector<8x128xf32> to vector<8xf32>
    %c0_9 = arith.constant 0 : index
    %12 = memref.load %arg5[%c0_9] : memref<1xf32, #tpu.memory_space<smem>>
    %13 = vector.broadcast %12 : f32 to vector<8xf32>
    %14 = arith.addf %11, %13 : vector<8xf32>
    %15 = vector.shape_cast %14 : vector<8xf32> to vector<1x1x8xf32>
    %c0_10 = arith.constant 0 : index
    %c0_11 = arith.constant 0 : index
    %c0_12 = arith.constant 0 : index
    %16 = vector.load %arg6[%c0_10, %c0_11, %c0_12] : memref<1x1x8xf32, #tpu.memory_space<vmem>>, vector<1x1x8xf32>
    tpu.vector_store %arg6[%c0_10, %c0_11, %c0_12], %15 {strides = array<i32>} : memref<1x1x8xf32, #tpu.memory_space<vmem>>, vector<1x1x8xf32>,
    return
  }
  func.func @transform_0(%arg0: i32) -> (i32, i32) {
    %c0_i32 = arith.constant 0 : i32
    %c0_i32_0 = arith.constant 0 : i32
    return %arg0, %c0_i32 : i32, i32
  }
  func.func @transform_1(%arg0: i32) -> (i32, i32) {
    %c0_i32 = arith.constant 0 : i32
    %c0_i32_0 = arith.constant 0 : i32
    %c0_i32_1 = arith.constant 0 : i32
    return %c0_i32, %c0_i32_0 : i32, i32
  }
  func.func @transform_2(%arg0: i32) -> (i32, i32) {
    %c0_i32 = arith.constant 0 : i32
    %c0_i32_0 = arith.constant 0 : i32
    %c0_i32_1 = arith.constant 0 : i32
    return %c0_i32, %c0_i32_0 : i32, i32
  }
  func.func @transform_3(%arg0: i32) -> (i32, i32) {
    %c0_i32 = arith.constant 0 : i32
    %c0_i32_0 = arith.constant 0 : i32
    %c0_i32_1 = arith.constant 0 : i32
    return %c0_i32, %c0_i32_0 : i32, i32
  }
  func.func @transform_4(%arg0: i32) -> i32 {
    %c0_i32 = arith.constant 0 : i32
    %c0_i32_0 = arith.constant 0 : i32
    return %c0_i32 : i32
  }
  func.func @transform_5(%arg0: i32) -> (i32, i32, i32) {
    %c0_i32 = arith.constant 0 : i32
    %c0_i32_0 = arith.constant 0 : i32
    %c0_i32_1 = arith.constant 0 : i32
    return %arg0, %c0_i32, %c0_i32_0 : i32, i32, i32
  }
}

</mosaic_0001>

<bundles_post_ra>
// kernel: tpu_custom_call.1
= control target key start
LH: loop header
LB: loop body
LE: loop exit
PB: predicated region body
PF: predicated region fallthrough
CT: control target
= control target key end

     0   :  { %11 = vsyncpa [#allocation4], 0  ;;  %s358_s0 = inlined_call_operand.hbm [shape: f32[8,16], index: 0, kind: input, shape index: {}]   ;;  %s359_s1 = inlined_call_operand.hbm [shape: f32[16,128], index: 1, kind: input, shape index: {}]   ;;  %s360_s2 = inlined_call_operand.vmem [shape: f32[1,128], index: 2, kind: input, shape index: {}]   ;;  %s361_s3 = inlined_call_operand.vmem [shape: f32[1,128], index: 3, kind: input, shape index: {}]   ;;  %s362_s4 = inlined_call_operand.<no memory space> [shape: f32[1], index: 4, kind: input, shape index: {}]   ;;  %s363_s5 = inlined_call_operand.hbm [shape: f32[1,1,8], index: 5, kind: output, shape index: {}]  }
   0x1   :  { %12 = vsyncpa [#allocation7], 0 }
   0x2   :  { %13 = vsyncpa [#allocation5], 0  ;;  %s268_s18 = smov [#allocation3]   ;;  %s269_s20 = smov [#allocation6]  }
   0x3   :  { %s20_s19 = sshll.u32 %s268_s18, 4  ;;  %s29_s21 = sshll.u32 %s269_s20, 4  ;;  %s21_s19 = int_to_ptr.vmem [resolvable:$true] %s20_s19  ;;  %s306_s21 = int_to_ptr.vmem [resolvable:$true] %s29_s21 }
   0x4   :  { %s196_s24 = scalar_lea.hbm %s358_s0, 128 }
   0x5   :  { %p197_p0 = scmp.ne.s32.totalorder %s358_s0, %s196_s24  ;;  %p200_p1 = scmp.lt.u32.totalorder %s196_s24, %s358_s0 }
   0x7   :  { %p202_p2 = pnand %p200_p1, %p197_p0 }
   0x9   :  { %205 = shalt.err (!%p202_p2)
}
   0xa   :  { %s206_s29 = scalar_lea.vmem %s21_s19, 128  ;;  %p211_p4 = scmp.lt.s32.totalorder %s21_s19, %s21_s19 }
   0xb   :  { %p207_p3 = scmp.ne.s32.totalorder %s21_s19, %s206_s29  ;;  %p212_p5 = scmp.lt.s32.totalorder %s206_s29, %s206_s29 }
   0xd   :  { %p213_p6 = por %p212_p5, %p211_p4 }
   0xf   :  { %p214_p7 = pnand %p213_p6, %p207_p3 }
  0x11   :  { %217 = shalt.err (!%p214_p7)
}
  0x12   :  { %23 = dma.hbm_to_vmem [thread:$0]  %s358_s0, 128, %s21_s19, [#allocation4]  }
  0x13   :  { %s218_s9 = scalar_lea.hbm %s359_s1, 256 }
  0x14   :  { %p219_p8 = scmp.ne.s32.totalorder %s359_s1, %s218_s9  ;;  %p222_p9 = scmp.lt.u32.totalorder %s218_s9, %s359_s1 }
  0x16   :  { %p224_p10 = pnand %p222_p9, %p219_p8 }
  0x18   :  { %227 = shalt.err (!%p224_p10)
}
  0x19   :  { %s228_s14 = scalar_lea.vmem %s306_s21, 256  ;;  %p233_p12 = scmp.lt.s32.totalorder %s306_s21, %s306_s21 }
  0x1a   :  { %p229_p11 = scmp.ne.s32.totalorder %s306_s21, %s228_s14  ;;  %p234_p13 = scmp.lt.s32.totalorder %s228_s14, %s228_s14 }
  0x1c   :  { %p235_p0 = por %p234_p13, %p233_p12 }
  0x1e   :  { %p236_p1 = pnand %p235_p0, %p229_p11 }
  0x20   :  { %239 = shalt.err (!%p236_p1)
}
  0x21   :  { %s270_s0 = smov 128   ;;  %s271_s15 = smov 8  }
  0x22   :  { %35 = dma.hbm_to_vmem [thread:$0]  %s359_s1, 256, %s306_s21, [#allocation7], %s270_s0, %s270_s0, %s271_s15  }
  0x23   :  { %262 = dma.done.wait [#allocation4], 128  }
  0x24   :  { %263 = vsyncadd [#allocation4], 4294967168 }
  0x25   :  { %264 = dma.done.wait [#allocation7], 256  }
  0x26   :  { %265 = vsyncadd [#allocation7], 4294967040  ;;  %v272_v0 = vmov 0.0|0.0   ;;  %vm273_vm0 = vmmov 0   ;;  %v274_v1 = vmov 0.0   ;;  %v49_v2 = vld [vmem:[#allocation6] sm:$0xff]  ;;  %v147_v13 = vlaneseq }
  0x27   :  { %185 = vmatprep.subr.bf16.mxu0 %v272_v0  ;;  %182 = vmatprep.mubr.msk.f32.mxu0 %vm273_vm0, %v274_v1  ;;  %v50_v3 = vld [vmem:[#allocation6 + $0x8] sm:$0xff]  ;;  %v48_v5 = vld [vmem:[#allocation3] sm:$0xff]  ;;  %vm58_vm1 = vcmask 130048   ;;  %v144_v16 = vstv %s362_s4  ;;  %vm154_vm2 = vcmask 57344  }
  0x28   :  { %v186_v4 = vpack.c.bf16 %v50_v3, %v49_v2  ;;  %v172_v6 = vld [vmem:[%s360_s2] ss:$0 sm:$0xff]  ;;  %v148_v14 = vand.u32 127, %v147_v13  ;;  %v150_v15 = vshrl.u32 %v147_v13, 7  ;;  %s275_s2 = smov [#allocation8]  }
  0x29   :  { %v174_v10 = vld [vmem:[%s361_s3] ss:$0 sm:$0xff]  ;;  %s162_s23 = sshll.u32 %s275_s2, 4  ;;  %s163_s23 = int_to_ptr.vmem [resolvable:$true] %s162_s23 }
  0x2a   :  { %187 = vmatpush3.bf16.msra.mxu0 %v186_v4  ;;  %v151_v17 = vsub.s32 %v148_v14, %v150_v15  ;;  %s240_s3 = scalar_lea.vmem %s163_s23, 16  ;;  %s244_s24 = scalar_lea.vmem %s163_s23, 32 }
  0x2b   :  { %p241_p2 = scmp.ne.s32.totalorder %s163_s23, %s240_s3  ;;  %p245_p3 = scmp.lt.s32.totalorder %s163_s23, %s163_s23 }
  0x2c   :  { %p246_p4 = scmp.lt.s32.totalorder %s244_s24, %s240_s3 }
  0x2d   :  { %183 = vmatmul.mubr.msk.f32.vlgmr.msra.gmra.mrb[0].mxu0 %vm58_vm1, %v48_v5 }
  0x2e   :  { %p247_p5 = por %p246_p4, %p245_p3 }
  0x30   :  { %p248_p6 = pnand %p247_p5, %p241_p2 }
 0x100   :  { %v128_v7 = vpop.f32.mrb[0].mxu0 }
 0x101   :  { %v129_v8 = vadd.f32 %v172_v6, %v128_v7  ;;  %v184_v9 = vpop.f32.mrb[1].mxu0 }
 0x103   :  { %v132_v11 = vmax.f32 %v129_v8, 0.0 }
 0x105   :  { %v140_v12 = vmul.f32 %v174_v10, %v132_v11 }
 0x107   :  { %141 = vadd.xlane.f32.xlu0 %v140_v12 }
 0x194   :  { %v142_v18 = vpop.xlane.xlu0 %141 }
 0x195   :  { %v145_v19 = vadd.f32 %v144_v16, %v142_v18 }
 0x197   :  { %v152_v20 = vrot.slane %v145_v19, %v151_v17 }
 0x199   :  { %155 = vst.msk [vmem:[#allocation8] sm:$0x1] %vm154_vm2, %v152_v20 }
 0x19a   :  { %251 = shalt.err (!%p248_p6)
}
 0x19b   :  { %s252_s4 = scalar_lea.hbm %s363_s5, 16 }
 0x19c   :  { %p253_p7 = scmp.ne.s32.totalorder %s363_s5, %s252_s4  ;;  %p256_p8 = scmp.lt.u32.totalorder %s252_s4, %s363_s5 }
 0x19e   :  { %p258_p9 = pnand %p256_p8, %p253_p7 }
 0x1a0   :  { %261 = shalt.err (!%p258_p9)
}
 0x1a1   :  { %165 = dma.vmem_to_hbm [thread:$0]  %s163_s23, 16, %s363_s5, [#allocation5]  }
 0x1a2   :  { %266 = dma.done.wait [#allocation5], 16  }
 0x1a3   :  { %267 = vsyncadd [#allocation5], 4294967280 }
 0x1a4   :  { %169 = vsyncpa [#allocation4], 1 }
 0x1a5   :  { %170 = vsyncpa [#allocation7], 1 }
 0x1a6   :  { %171 = vsyncpa [#allocation5], 1 }

</bundles_post_ra>
